<compile_context>
chip_gen: v7x
topology: tpu7x:2x2x1
jax: 0.10.0
libtpu: 0.0.40
codegen_flags: <defaults>
</compile_context>

<pallas_src>
from functools import partial

import jax
import jax.numpy as jnp
from jax.experimental import pallas as pl
from jax.experimental.pallas import tpu as pltpu

EPS = 1e-5


def _conv_bn_relu_rows(v, wb_ref, gamma_b, beta_b, m_chan, *, N, H, W, c_in, c_out):
    """One Conv3x3(pad=1) + train-mode BN + ReLU on row-form activations.

    v       : (N, H, W*c_in) f32 value (lane axis carries W*c_in)
    wb_ref  : (3, W*c_in, W*c_out) bf16 VMEM ref, banded weight per vertical tap
    gamma_b : (1, W*c_out) f32, BN gamma tiled across the W lane groups
    beta_b  : (1, W*c_out) f32, BN beta  tiled across the W lane groups
    m_chan  : (W*c_out, W*c_out) f32 0/1 channel-mix matrix (reduce+broadcast)
    returns : (N, H, W*c_out) f32
    """
    # bf16 operands for the MXU; accumulation and everything else stays f32.
    vb = v.astype(jnp.bfloat16)
    # Vertical 1-px halo only (the horizontal halo is folded into wb).
    zh = jnp.zeros((N, 1, W * c_in), jnp.bfloat16)
    vp = jnp.concatenate([zh, vb, zh], axis=1)                 # (N, H+2, W*c_in)

    # Three accumulating matmuls, one per vertical tap dy — no im2col patch
    # tensor is materialized; f32 accumulator.
    acc = jnp.zeros((N * H, W * c_out), jnp.float32)
    for dy in range(3):
        rows = vp[:, dy:dy + H, :].reshape(N * H, W * c_in)
        acc = acc + jnp.dot(rows, wb_ref[dy],
                            preferred_element_type=jnp.float32)

    # Train-mode BatchNorm, fused single-pass stats (sum & sum of squares).
    # Per-channel reduce across the W lane groups + broadcast back is one tiny
    # MXU matmul against the 0/1 channel-mix matrix.
    m_total = float(N * H * W)
    s = jnp.sum(acc, axis=0, keepdims=True)                    # (1, W*c_out)
    ss = jnp.sum(acc * acc, axis=0, keepdims=True)             # (1, W*c_out)
    stats = jnp.dot(jnp.concatenate([s, ss], axis=0), m_chan,
                    preferred_element_type=jnp.float32) * (1.0 / m_total)
    mean = stats[0:1, :]
    var = stats[1:2, :] - mean * mean                          # biased variance
    scale = jax.lax.rsqrt(var + EPS) * gamma_b
    shift = beta_b - mean * scale                              # folded affine
    y = jnp.maximum(acc * scale + shift, 0.0)                  # one mul-add + relu
    return y.reshape(N, H, W * c_out)


def double_conv_kernel(x_ref, wb1_ref, g1_ref, be1_ref, wb2_ref, g2_ref, be2_ref,
                       m_ref, o_ref, *, N, H, W, c_in, c_out):
    # x_ref : (N, H, W*c_in)  row-form input
    # o_ref : (N, H, W*c_out) row-form output (lane-dense, unmasked store)
    y1 = _conv_bn_relu_rows(x_ref[...], wb1_ref, g1_ref[...], be1_ref[...],
                            m_ref[...], N=N, H=H, W=W, c_in=c_in, c_out=c_out)
    o_ref[...] = _conv_bn_relu_rows(y1, wb2_ref, g2_ref[...], be2_ref[...],
                                    m_ref[...], N=N, H=H, W=W, c_in=c_out,
                                    c_out=c_out)


def _band_weight(w_oihw, W):
    """OIHW 3x3 weight -> (3, W*Cin, W*Cout) banded per-vertical-tap matrices.

    The horizontal 1-px zero halo is folded in: output-pixel column xo takes
    tap dx = xi - xo + 1 from input-pixel block xi when dx is in {0,1,2};
    boundary columns simply omit out-of-range taps.  Vectorized construction
    (one gather + mask + transpose + reshape), no per-call scatter loop.
    """
    c_out, c_in, _, _ = w_oihw.shape
    w = jnp.transpose(w_oihw, (2, 3, 1, 0)).astype(jnp.float32)  # (dy, dx, Cin, Cout)
    xi = jnp.arange(W)[:, None]
    xo = jnp.arange(W)[None, :]
    dx = xi - xo + 1                                             # (W, W)
    valid = ((dx >= 0) & (dx <= 2)).astype(jnp.float32)
    taps = jnp.take(w, jnp.clip(dx, 0, 2), axis=1)               # (3, W, W, Cin, Cout)
    band = taps * valid[None, :, :, None, None]
    band = jnp.transpose(band, (0, 1, 3, 2, 4))                  # (dy, xi, Cin, xo, Cout)
    return band.reshape(3, W * c_in, W * c_out)


def _channel_mix_matrix(W, c_out):
    """(W*c_out, W*c_out) 0/1 matrix: M[i, j] = 1 iff i, j are the same channel."""
    ch = jnp.arange(W * c_out) % c_out
    return (ch[:, None] == ch[None, :]).astype(jnp.float32)


def double_conv_prepare(params, *, W):
    """One-time (per parameter update) prep: banded bf16 weights, lane-tiled
    BN affine, channel-mix matrix.  Keep this out of the per-step path."""
    w1, b1, g1, be1, w2, b2, g2, be2 = params
    del b1, b2  # conv bias before train-mode BN cancels in the mean subtraction
    c_out = w1.shape[0]
    tile = lambda v: jnp.tile(v.astype(jnp.float32), (W,)).reshape(1, W * c_out)
    return (_band_weight(w1, W).astype(jnp.bfloat16), tile(g1), tile(be1),
            _band_weight(w2, W).astype(jnp.bfloat16), tile(g2), tile(be2),
            _channel_mix_matrix(W, c_out))


@jax.jit
def double_conv_pallas(x_nchw, prepped):
    """x_nchw: (N, Cin, H, W) float32. Returns (N, Cout, H, W) float32."""
    wb1, g1b, be1b, wb2, g2b, be2b, m_chan = prepped
    N, c_in, H, W = x_nchw.shape
    c_out = g1b.shape[1] // W

    # Layout plumbing (cheap XLA ops): NCHW -> row form (N, H, W*Cin).
    # TODO(synk): when chaining DoubleConvs keep activations in row form to
    # skip the NCHW <-> row-form transposes at every module boundary.
    x_rows = jnp.transpose(x_nchw, (0, 2, 3, 1)).reshape(N, H, W * c_in)

    vmem = pl.BlockSpec(memory_space=pltpu.MemorySpace.VMEM)
    kernel = partial(double_conv_kernel, N=N, H=H, W=W, c_in=c_in, c_out=c_out)
    out_rows = pl.pallas_call(
        kernel,
        out_shape=jax.ShapeDtypeStruct((N, H, W * c_out), jnp.float32),
        in_specs=[vmem] * 8,
        out_specs=vmem,
    )(x_rows, wb1, g1b, be1b, wb2, g2b, be2b, m_chan)

    # Row form -> NCHW expected by the PyTorch module contract.
    return jnp.transpose(out_rows.reshape(N, H, W, c_out), (0, 3, 1, 2))


def double_conv_ref(x, params):
    """Pure-JAX f32 reference, NCHW (mirrors the PyTorch module in train mode)."""
    w1, b1, g1, be1, w2, b2, g2, be2 = params

    def conv_bn_relu(x, w, b, g, be):
        y = jax.lax.conv_general_dilated(
            x, w, window_strides=(1, 1), padding=((1, 1), (1, 1)),
            dimension_numbers=('NCHW', 'OIHW', 'NCHW'),
            precision=jax.lax.Precision.HIGHEST) + b[None, :, None, None]
        mean = jnp.mean(y, axis=(0, 2, 3), keepdims=True)
        var = jnp.mean((y - mean) ** 2, axis=(0, 2, 3), keepdims=True)
        y = (y - mean) * jax.lax.rsqrt(var + EPS) \
            * g[None, :, None, None] + be[None, :, None, None]
        return jnp.maximum(y, 0.0)

    y = conv_bn_relu(x, w1, b1, g1, be1)
    return conv_bn_relu(y, w2, b2, g2, be2)


def init_params(key, c_in, c_out):
    ks = jax.random.split(key, 8)
    w1 = 0.1 * jax.random.normal(ks[0], (c_out, c_in, 3, 3), jnp.float32)
    b1 = 0.1 * jax.random.normal(ks[1], (c_out,), jnp.float32)
    g1 = 1.0 + 0.1 * jax.random.normal(ks[2], (c_out,), jnp.float32)
    be1 = 0.1 * jax.random.normal(ks[3], (c_out,), jnp.float32)
    w2 = 0.1 * jax.random.normal(ks[4], (c_out, c_out, 3, 3), jnp.float32)
    b2 = 0.1 * jax.random.normal(ks[5], (c_out,), jnp.float32)
    g2 = 1.0 + 0.1 * jax.random.normal(ks[6], (c_out,), jnp.float32)
    be2 = 0.1 * jax.random.normal(ks[7], (c_out,), jnp.float32)
    return (w1, b1, g1, be1, w2, b2, g2, be2)


if __name__ == "__main__":
    key = jax.random.PRNGKey(0)
    k_x, k_p = jax.random.split(key)

    N, C_IN, C_OUT, H, W = 2, 4, 8, 16, 16
    x = jax.random.normal(k_x, (N, C_IN, H, W), jnp.float32)
    params = init_params(k_p, C_IN, C_OUT)

    # One-time prep (banded bf16 weights etc.); reused across forwards.
    prepped = double_conv_prepare(params, W=W)

    out = jax.block_until_ready(double_conv_pallas(x, prepped))
    ref = jax.block_until_ready(double_conv_ref(x, params))

    assert out.shape == (N, C_OUT, H, W), out.shape
    err = float(jnp.max(jnp.abs(out - ref)))
    # bf16 MXU operands (per perf review) give ~1e-2-level max abs error vs the
    # f32 reference after two conv+BN layers; elementwise/BN math stays f32.
    assert jnp.allclose(out, ref, atol=3e-2, rtol=3e-2), err
    print("KERNEL_OK")
</pallas_src>

<mosaic_0001>
module attributes {stable_mosaic.version = 11 : i64} {
  func.func @double_conv_kernel(%arg0: memref<2x16x64xf32, #tpu.memory_space<vmem>>, %arg1: memref<3x64x128xbf16, #tpu.memory_space<vmem>>, %arg2: memref<1x128xf32, #tpu.memory_space<vmem>>, %arg3: memref<1x128xf32, #tpu.memory_space<vmem>>, %arg4: memref<3x128x128xbf16, #tpu.memory_space<vmem>>, %arg5: memref<1x128xf32, #tpu.memory_space<vmem>>, %arg6: memref<1x128xf32, #tpu.memory_space<vmem>>, %arg7: memref<128x128xf32, #tpu.memory_space<vmem>>, %arg8: memref<2x16x128xf32, #tpu.memory_space<vmem>>) attributes {dimension_semantics = [], scalar_prefetch = 0 : i64, scratch_operands = 0 : i64, tpu.core_type = #tpu.core_type<tc>} {
    %c0 = arith.constant 0 : index
    %c0_0 = arith.constant 0 : index
    %c0_1 = arith.constant 0 : index
    %0 = vector.load %arg0[%c0, %c0_0, %c0_1] : memref<2x16x64xf32, #tpu.memory_space<vmem>>, vector<2x16x64xf32>
    %c0_2 = arith.constant 0 : index
    %c0_3 = arith.constant 0 : index
    %1 = vector.load %arg2[%c0_2, %c0_3] : memref<1x128xf32, #tpu.memory_space<vmem>>, vector<1x128xf32>
    %c0_4 = arith.constant 0 : index
    %c0_5 = arith.constant 0 : index
    %2 = vector.load %arg3[%c0_4, %c0_5] : memref<1x128xf32, #tpu.memory_space<vmem>>, vector<1x128xf32>
    %c0_6 = arith.constant 0 : index
    %c0_7 = arith.constant 0 : index
    %3 = vector.load %arg7[%c0_6, %c0_7] : memref<128x128xf32, #tpu.memory_space<vmem>>, vector<128x128xf32>
    %4 = arith.truncf %0 : vector<2x16x64xf32> to vector<2x16x64xbf16>
    %cst = arith.constant 0.000000e+00 : bf16
    %5 = vector.broadcast %cst : bf16 to vector<2x1x64xbf16>
    %6 = tpu.concatenate %5, %4, %5 in 1 : vector<2x1x64xbf16>, vector<2x16x64xbf16>, vector<2x1x64xbf16> -> vector<2x18x64xbf16>
    %cst_8 = arith.constant 0.000000e+00 : f32
    %7 = vector.broadcast %cst_8 : f32 to vector<32x128xf32>
    %8 = vector.extract_strided_slice %6 {offsets = [0, 0, 0], sizes = [2, 16, 64], strides = [1, 1, 1]} : vector<2x18x64xbf16> to vector<2x16x64xbf16>
    %9 = vector.shape_cast %8 : vector<2x16x64xbf16> to vector<32x64xbf16>
    %c0_9 = arith.constant 0 : index
    %c0_10 = arith.constant 0 : index
    %c0_11 = arith.constant 0 : index
    %10 = vector.load %arg1[%c0_9, %c0_10, %c0_11] : memref<3x64x128xbf16, #tpu.memory_space<vmem>>, vector<1x64x128xbf16>
    %11 = vector.shape_cast %10 : vector<1x64x128xbf16> to vector<64x128xbf16>
    %cst_12 = arith.constant dense<0.000000e+00> : vector<32x128xf32>
    %12 = tpu.matmul %9, %11, %cst_12 {dimension_numbers = #tpu.dot_dimension_numbers<[1], [0], [0], [1], [0, 0, 1, 1], [], []>} : vector<32x64xbf16>, vector<64x128xbf16>, vector<32x128xf32> -> vector<32x128xf32>
    %13 = arith.addf %7, %12 : vector<32x128xf32>
    %14 = vector.extract_strided_slice %6 {offsets = [0, 1, 0], sizes = [2, 16, 64], strides = [1, 1, 1]} : vector<2x18x64xbf16> to vector<2x16x64xbf16>
    %15 = vector.shape_cast %14 : vector<2x16x64xbf16> to vector<32x64xbf16>
    %c1 = arith.constant 1 : index
    %c0_13 = arith.constant 0 : index
    %c0_14 = arith.constant 0 : index
    %16 = vector.load %arg1[%c1, %c0_13, %c0_14] : memref<3x64x128xbf16, #tpu.memory_space<vmem>>, vector<1x64x128xbf16>
    %17 = vector.shape_cast %16 : vector<1x64x128xbf16> to vector<64x128xbf16>
    %cst_15 = arith.constant dense<0.000000e+00> : vector<32x128xf32>
    %18 = tpu.matmul %15, %17, %cst_15 {dimension_numbers = #tpu.dot_dimension_numbers<[1], [0], [0], [1], [0, 0, 1, 1], [], []>} : vector<32x64xbf16>, vector<64x128xbf16>, vector<32x128xf32> -> vector<32x128xf32>
    %19 = arith.addf %13, %18 : vector<32x128xf32>
    %20 = vector.extract_strided_slice %6 {offsets = [0, 2, 0], sizes = [2, 16, 64], strides = [1, 1, 1]} : vector<2x18x64xbf16> to vector<2x16x64xbf16>
    %21 = vector.shape_cast %20 : vector<2x16x64xbf16> to vector<32x64xbf16>
    %c2 = arith.constant 2 : index
    %c0_16 = arith.constant 0 : index
    %c0_17 = arith.constant 0 : index
    %22 = vector.load %arg1[%c2, %c0_16, %c0_17] : memref<3x64x128xbf16, #tpu.memory_space<vmem>>, vector<1x64x128xbf16>
    %23 = vector.shape_cast %22 : vector<1x64x128xbf16> to vector<64x128xbf16>
    %cst_18 = arith.constant dense<0.000000e+00> : vector<32x128xf32>
    %24 = tpu.matmul %21, %23, %cst_18 {dimension_numbers = #tpu.dot_dimension_numbers<[1], [0], [0], [1], [0, 0, 1, 1], [], []>} : vector<32x64xbf16>, vector<64x128xbf16>, vector<32x128xf32> -> vector<32x128xf32>
    %25 = arith.addf %19, %24 : vector<32x128xf32>
    %cst_19 = arith.constant dense<0.000000e+00> : vector<128xf32>
    %26 = vector.multi_reduction <add>, %25, %cst_19 [0] : vector<32x128xf32> to vector<128xf32>
    %27 = vector.shape_cast %26 : vector<128xf32> to vector<1x128xf32>
    %28 = arith.mulf %25, %25 : vector<32x128xf32>
    %cst_20 = arith.constant dense<0.000000e+00> : vector<128xf32>
    %29 = vector.multi_reduction <add>, %28, %cst_20 [0] : vector<32x128xf32> to vector<128xf32>
    %30 = vector.shape_cast %29 : vector<128xf32> to vector<1x128xf32>
    %31 = tpu.concatenate %27, %30 in 0 : vector<1x128xf32>, vector<1x128xf32> -> vector<2x128xf32>
    %cst_21 = arith.constant dense<0.000000e+00> : vector<2x128xf32>
    %32 = tpu.matmul %31, %3, %cst_21 {dimension_numbers = #tpu.dot_dimension_numbers<[1], [0], [0], [1], [0, 0, 1, 1], [], []>} : vector<2x128xf32>, vector<128x128xf32>, vector<2x128xf32> -> vector<2x128xf32>
    %cst_22 = arith.constant 0.001953125 : f32
    %33 = vector.broadcast %cst_22 : f32 to vector<2x128xf32>
    %34 = arith.mulf %32, %33 : vector<2x128xf32>
    %35 = vector.extract_strided_slice %34 {offsets = [0, 0], sizes = [1, 128], strides = [1, 1]} : vector<2x128xf32> to vector<1x128xf32>
    %36 = vector.extract_strided_slice %34 {offsets = [1, 0], sizes = [1, 128], strides = [1, 1]} : vector<2x128xf32> to vector<1x128xf32>
    %37 = arith.mulf %35, %35 : vector<1x128xf32>
    %38 = arith.subf %36, %37 : vector<1x128xf32>
    %cst_23 = arith.constant 9.99999974E-6 : f32
    %39 = vector.broadcast %cst_23 : f32 to vector<1x128xf32>
    %40 = arith.addf %38, %39 : vector<1x128xf32>
    %41 = math.rsqrt %40 : vector<1x128xf32>
    %42 = arith.mulf %41, %1 : vector<1x128xf32>
    %43 = arith.mulf %35, %42 : vector<1x128xf32>
    %44 = arith.subf %2, %43 : vector<1x128xf32>
    %45 = vector.broadcast %42 : vector<1x128xf32> to vector<32x128xf32>
    %46 = arith.mulf %25, %45 : vector<32x128xf32>
    %47 = vector.broadcast %44 : vector<1x128xf32> to vector<32x128xf32>
    %48 = arith.addf %46, %47 : vector<32x128xf32>
    %cst_24 = arith.constant 0.000000e+00 : f32
    %49 = vector.broadcast %cst_24 : f32 to vector<32x128xf32>
    %50 = arith.maximumf %48, %49 : vector<32x128xf32>
    %51 = vector.shape_cast %50 : vector<32x128xf32> to vector<2x16x128xf32>
    %c0_25 = arith.constant 0 : index
    %c0_26 = arith.constant 0 : index
    %52 = vector.load %arg5[%c0_25, %c0_26] : memref<1x128xf32, #tpu.memory_space<vmem>>, vector<1x128xf32>
    %c0_27 = arith.constant 0 : index
    %c0_28 = arith.constant 0 : index
    %53 = vector.load %arg6[%c0_27, %c0_28] : memref<1x128xf32, #tpu.memory_space<vmem>>, vector<1x128xf32>
    %c0_29 = arith.constant 0 : index
    %c0_30 = arith.constant 0 : index
    %54 = vector.load %arg7[%c0_29, %c0_30] : memref<128x128xf32, #tpu.memory_space<vmem>>, vector<128x128xf32>
    %55 = arith.truncf %51 : vector<2x16x128xf32> to vector<2x16x128xbf16>
    %cst_31 = arith.constant 0.000000e+00 : bf16
    %56 = vector.broadcast %cst_31 : bf16 to vector<2x1x128xbf16>
    %57 = tpu.concatenate %56, %55, %56 in 1 : vector<2x1x128xbf16>, vector<2x16x128xbf16>, vector<2x1x128xbf16> -> vector<2x18x128xbf16>
    %cst_32 = arith.constant 0.000000e+00 : f32
    %58 = vector.broadcast %cst_32 : f32 to vector<32x128xf32>
    %59 = vector.extract_strided_slice %57 {offsets = [0, 0, 0], sizes = [2, 16, 128], strides = [1, 1, 1]} : vector<2x18x128xbf16> to vector<2x16x128xbf16>
    %60 = vector.shape_cast %59 : vector<2x16x128xbf16> to vector<32x128xbf16>
    %c0_33 = arith.constant 0 : index
    %c0_34 = arith.constant 0 : index
    %c0_35 = arith.constant 0 : index
    %61 = vector.load %arg4[%c0_33, %c0_34, %c0_35] : memref<3x128x128xbf16, #tpu.memory_space<vmem>>, vector<1x128x128xbf16>
    %62 = vector.shape_cast %61 : vector<1x128x128xbf16> to vector<128x128xbf16>
    %cst_36 = arith.constant dense<0.000000e+00> : vector<32x128xf32>
    %63 = tpu.matmul %60, %62, %cst_36 {dimension_numbers = #tpu.dot_dimension_numbers<[1], [0], [0], [1], [0, 0, 1, 1], [], []>} : vector<32x128xbf16>, vector<128x128xbf16>, vector<32x128xf32> -> vector<32x128xf32>
    %64 = arith.addf %58, %63 : vector<32x128xf32>
    %65 = vector.extract_strided_slice %57 {offsets = [0, 1, 0], sizes = [2, 16, 128], strides = [1, 1, 1]} : vector<2x18x128xbf16> to vector<2x16x128xbf16>
    %66 = vector.shape_cast %65 : vector<2x16x128xbf16> to vector<32x128xbf16>
    %c1_37 = arith.constant 1 : index
    %c0_38 = arith.constant 0 : index
    %c0_39 = arith.constant 0 : index
    %67 = vector.load %arg4[%c1_37, %c0_38, %c0_39] : memref<3x128x128xbf16, #tpu.memory_space<vmem>>, vector<1x128x128xbf16>
    %68 = vector.shape_cast %67 : vector<1x128x128xbf16> to vector<128x128xbf16>
    %cst_40 = arith.constant dense<0.000000e+00> : vector<32x128xf32>
    %69 = tpu.matmul %66, %68, %cst_40 {dimension_numbers = #tpu.dot_dimension_numbers<[1], [0], [0], [1], [0, 0, 1, 1], [], []>} : vector<32x128xbf16>, vector<128x128xbf16>, vector<32x128xf32> -> vector<32x128xf32>
    %70 = arith.addf %64, %69 : vector<32x128xf32>
    %71 = vector.extract_strided_slice %57 {offsets = [0, 2, 0], sizes = [2, 16, 128], strides = [1, 1, 1]} : vector<2x18x128xbf16> to vector<2x16x128xbf16>
    %72 = vector.shape_cast %71 : vector<2x16x128xbf16> to vector<32x128xbf16>
    %c2_41 = arith.constant 2 : index
    %c0_42 = arith.constant 0 : index
    %c0_43 = arith.constant 0 : index
    %73 = vector.load %arg4[%c2_41, %c0_42, %c0_43] : memref<3x128x128xbf16, #tpu.memory_space<vmem>>, vector<1x128x128xbf16>
    %74 = vector.shape_cast %73 : vector<1x128x128xbf16> to vector<128x128xbf16>
    %cst_44 = arith.constant dense<0.000000e+00> : vector<32x128xf32>
    %75 = tpu.matmul %72, %74, %cst_44 {dimension_numbers = #tpu.dot_dimension_numbers<[1], [0], [0], [1], [0, 0, 1, 1], [], []>} : vector<32x128xbf16>, vector<128x128xbf16>, vector<32x128xf32> -> vector<32x128xf32>
    %76 = arith.addf %70, %75 : vector<32x128xf32>
    %cst_45 = arith.constant dense<0.000000e+00> : vector<128xf32>
    %77 = vector.multi_reduction <add>, %76, %cst_45 [0] : vector<32x128xf32> to vector<128xf32>
    %78 = vector.shape_cast %77 : vector<128xf32> to vector<1x128xf32>
    %79 = arith.mulf %76, %76 : vector<32x128xf32>
    %cst_46 = arith.constant dense<0.000000e+00> : vector<128xf32>
    %80 = vector.multi_reduction <add>, %79, %cst_46 [0] : vector<32x128xf32> to vector<128xf32>
    %81 = vector.shape_cast %80 : vector<128xf32> to vector<1x128xf32>
    %82 = tpu.concatenate %78, %81 in 0 : vector<1x128xf32>, vector<1x128xf32> -> vector<2x128xf32>
    %cst_47 = arith.constant dense<0.000000e+00> : vector<2x128xf32>
    %83 = tpu.matmul %82, %54, %cst_47 {dimension_numbers = #tpu.dot_dimension_numbers<[1], [0], [0], [1], [0, 0, 1, 1], [], []>} : vector<2x128xf32>, vector<128x128xf32>, vector<2x128xf32> -> vector<2x128xf32>
    %cst_48 = arith.constant 0.001953125 : f32
    %84 = vector.broadcast %cst_48 : f32 to vector<2x128xf32>
    %85 = arith.mulf %83, %84 : vector<2x128xf32>
    %86 = vector.extract_strided_slice %85 {offsets = [0, 0], sizes = [1, 128], strides = [1, 1]} : vector<2x128xf32> to vector<1x128xf32>
    %87 = vector.extract_strided_slice %85 {offsets = [1, 0], sizes = [1, 128], strides = [1, 1]} : vector<2x128xf32> to vector<1x128xf32>
    %88 = arith.mulf %86, %86 : vector<1x128xf32>
    %89 = arith.subf %87, %88 : vector<1x128xf32>
    %cst_49 = arith.constant 9.99999974E-6 : f32
    %90 = vector.broadcast %cst_49 : f32 to vector<1x128xf32>
    %91 = arith.addf %89, %90 : vector<1x128xf32>
    %92 = math.rsqrt %91 : vector<1x128xf32>
    %93 = arith.mulf %92, %52 : vector<1x128xf32>
    %94 = arith.mulf %86, %93 : vector<1x128xf32>
    %95 = arith.subf %53, %94 : vector<1x128xf32>
    %96 = vector.broadcast %93 : vector<1x128xf32> to vector<32x128xf32>
    %97 = arith.mulf %76, %96 : vector<32x128xf32>
    %98 = vector.broadcast %95 : vector<1x128xf32> to vector<32x128xf32>
    %99 = arith.addf %97, %98 : vector<32x128xf32>
    %cst_50 = arith.constant 0.000000e+00 : f32
    %100 = vector.broadcast %cst_50 : f32 to vector<32x128xf32>
    %101 = arith.maximumf %99, %100 : vector<32x128xf32>
    %102 = vector.shape_cast %101 : vector<32x128xf32> to vector<2x16x128xf32>
    %c0_51 = arith.constant 0 : index
    %c0_52 = arith.constant 0 : index
    %c0_53 = arith.constant 0 : index
    %103 = vector.load %arg8[%c0_51, %c0_52, %c0_53] : memref<2x16x128xf32, #tpu.memory_space<vmem>>, vector<2x16x128xf32>
    tpu.vector_store %arg8[%c0_51, %c0_52, %c0_53], %102 {strides = array<i32>} : memref<2x16x128xf32, #tpu.memory_space<vmem>>, vector<2x16x128xf32>,
    return
  }
}

</mosaic_0001>

<bundles_post_ra>
// kernel: double_conv_pallas.1
= control target key start
LH: loop header
LB: loop body
LE: loop exit
PB: predicated region body
PF: predicated region fallthrough
CT: control target
= control target key end

     0   :  { %vm73_vm0 = vsmask.f32 256  ;;  %vm72_vm1 = vcmask 1040384   ;;  %vm87_vm3 = vsmask.f32 7424  ;;  %vm145_vm4 = vcmask 523264   ;;  %s1863_s1 = inlined_call_operand.vmem [shape: bf16[3,64,128], index: 1, kind: input, shape index: {}]   ;;  %s1864_s0 = inlined_call_operand.vmem [shape: f32[2,16,64], index: 0, kind: input, shape index: {}]   ;;  %s1865_s7 = inlined_call_operand.vmem [shape: f32[128,128], index: 7, kind: input, shape index: {}]   ;;  %s1866_s4 = inlined_call_operand.vmem [shape: bf16[3,128,128], index: 4, kind: input, shape index: {}]   ;;  %s1867_s2 = inlined_call_operand.vmem [shape: f32[1,128], index: 2, kind: input, shape index: {}]   ;;  %s1868_s3 = inlined_call_operand.vmem [shape: f32[1,128], index: 3, kind: input, shape index: {}]   ;;  %s1869_s5 = inlined_call_operand.vmem [shape: f32[1,128], index: 5, kind: input, shape index: {}]   ;;  %s1870_s6 = inlined_call_operand.vmem [shape: f32[1,128], index: 6, kind: input, shape index: {}]   ;;  %s1871_s8 = inlined_call_operand.vmem [shape: f32[2,16,128], index: 8, kind: output, shape index: {}]  }
   0x1   :  { %v1476_v0 = vld [vmem:[%s1863_s1 + $0x20] sm:$0xff]   ;;  %v1477_v1 = vld [vmem:[%s1863_s1 + $0x28] sm:$0xff]   ;;  %v1478_v2 = vld [vmem:[%s1863_s1 + $0x30] sm:$0xff]   ;;  %vm282_vm5 = vcmask 1046528   ;;  %v1516_v54 = vmov 0.0|0.0   ;;  %vm1517_vm6 = vmmov 0  }
   0x2   :  { %1243 = vmatprep.subr.bf16.mxu0 %v1476_v0  ;;  %v30_v3 = vld [vmem:[%s1864_s0] sm:$0xff]  ;;  %v31_v4 = vld [vmem:[%s1864_s0 + $0x8] sm:$0xff]  ;;  %v32_v6 = vld [vmem:[%s1864_s0 + $0x10] sm:$0xff] }
   0x3   :  { %1244 = vmatpush3.bf16.msra.mxu0 %v1476_v0  ;;  %v52_v5 = vpack.c.bf16 %v31_v4, %v30_v3  ;;  %v33_v7 = vld [vmem:[%s1864_s0 + $0x18] sm:$0xff]  ;;  %vm1589_vm2 = vmand %vm72_vm1, %vm73_vm0  ;;  %v1480_v20 = vld [vmem:[%s1863_s1] sm:$0xff]  }
   0x4   :  { %1245 = vmatprep.subr.bf16.mxu0 %v1477_v1  ;;  %v1479_v8 = vld [vmem:[%s1863_s1 + $0x38] sm:$0xff]   ;;  %v53_v11 = vpack.c.bf16 %v33_v7, %v32_v6  ;;  %v1481_v37 = vld [vmem:[%s1863_s1 + $0x8] sm:$0xff]   ;;  %v1482_v39 = vld [vmem:[%s1863_s1 + $0x10] sm:$0xff]  }
   0x5   :  { %v55_v9 = vshrl.u32 %v52_v5, 16  ;;  %v58_v10 = vshll.u32 %v52_v5, 16  ;;  %v1483_v40 = vld [vmem:[%s1863_s1 + $0x18] sm:$0xff]   ;;  %v1484_v42 = vld [vmem:[%s1863_s1 + $0x40] sm:$0xff]   ;;  %v1485_v44 = vld [vmem:[%s1863_s1 + $0x48] sm:$0xff]  }
   0x6   :  { %v62_v13 = vshrl.u32 %v53_v11, 16  ;;  %v65_v14 = vshll.u32 %v53_v11, 16  ;;  %v1486_v46 = vld [vmem:[%s1863_s1 + $0x50] sm:$0xff]   ;;  %v1487_v47 = vld [vmem:[%s1863_s1 + $0x58] sm:$0xff]   ;;  %v36_v50 = vld [vmem:[%s1865_s7] sm:$0xff]  ;;  %v1518_v11 = vmov 0.0  }
   0x7   :  { %1246 = vmatpush3.bf16.msra.mxu0 %v1477_v1  ;;  %v57_v12 = vrot.slane %v55_v9, 7  ;;  %v37_v51 = vld [vmem:[%s1865_s7 + $0x8] sm:$0xff]  ;;  %v38_v55 = vld [vmem:[%s1865_s7 + $0x10] sm:$0xff]  ;;  %v39_v56 = vld [vmem:[%s1865_s7 + $0x18] sm:$0xff] }
   0x8   :  { %1247 = vmatprep.subr.bf16.mxu0 %v1478_v2  ;;  %v64_v18 = vrot.slane %v62_v13, 7  ;;  %v1640_v53 = vpack.c.bf16 %v37_v51, %v36_v50  ;;  %v1651_v57 = vpack.c.bf16 %v39_v56, %v38_v55  ;;  %v40_v58 = vld [vmem:[%s1865_s7 + $0x20] sm:$0xff]  ;;  %v41_v59 = vld [vmem:[%s1865_s7 + $0x28] sm:$0xff]  ;;  %v42_v61 = vld [vmem:[%s1865_s7 + $0x30] sm:$0xff] }
   0x9   :  { %v60_v16 = vor.u32 %v58_v10, %v57_v12  ;;  %v77_v17 = vsel %vm1589_vm2, %v57_v12, 0  ;;  %v1662_v60 = vpack.c.bf16 %v41_v59, %v40_v58  ;;  %v43_v62 = vld [vmem:[%s1865_s7 + $0x38] sm:$0xff]  ;;  %v44_v0 = vld [vmem:[%s1865_s7 + $0x40] sm:$0xff]  ;;  %v45_v1 = vld [vmem:[%s1865_s7 + $0x48] sm:$0xff] }
   0xa   :  { %v96_v19 = vshll.u32 %v77_v17, 16  ;;  %v67_v22 = vor.u32 %v65_v14, %v64_v18  ;;  %v78_v23 = vsel %vm1589_vm2, %v64_v18, 0  ;;  %v284_v41 = vrot.slane %v77_v17, 1  ;;  %v46_v3 = vld [vmem:[%s1865_s7 + $0x50] sm:$0xff]  ;;  %v47_v4 = vld [vmem:[%s1865_s7 + $0x58] sm:$0xff]  ;;  %v48_v6 = vld [vmem:[%s1865_s7 + $0x60] sm:$0xff] }
   0xb   :  { %1248 = vmatpush3.bf16.msra.mxu0 %v1478_v2  ;;  %v75_v21 = vsel %vm1589_vm2, 0, %v60_v16  ;;  %v108_v26 = vshll.u32 %v78_v23, 16  ;;  %v287_v49 = vrot.slane %v78_v23, 1  ;;  %v1419_v63 = vpack.c.bf16 %v43_v62, %v42_v61  ;;  %v49_v7 = vld [vmem:[%s1865_s7 + $0x68] sm:$0xff]  ;;  %v50_v9 = vld [vmem:[%s1865_s7 + $0x70] sm:$0xff]  ;;  %v51_v10 = vld [vmem:[%s1865_s7 + $0x78] sm:$0xff] }
   0xc   :  { %1249 = vmatprep.subr.bf16.mxu0 %v1479_v8  ;;  %v89_v24 = vshrl.u32 %v75_v21, 16  ;;  %v91_v25 = vshll.u32 %v75_v21, 16  ;;  %v76_v27 = vsel %vm1589_vm2, 0, %v67_v22  ;;  %v98_v29 = vrot.slane %v96_v19, 1  ;;  %v1103_v59 = vld [vmem:[%s1867_s2] ss:$0 sm:$0xff] }
   0xd   :  { %v101_v30 = vshrl.u32 %v76_v27, 16  ;;  %v103_v31 = vshll.u32 %v76_v27, 16  ;;  %v110_v34 = vrot.slane %v108_v26, 1  ;;  %v283_v43 = vrot.slane %v75_v21, 1  ;;  %v1497_v15 = vld [vmem:[%s1866_s4 + $0x8] sm:$0xff]  }
   0xe   :  { %v93_v28 = vrot.slane %v91_v25, 1  ;;  %v286_v48 = vrot.slane %v76_v27, 1  ;;  %v1422_v2 = vpack.c.bf16 %v45_v1, %v44_v0  ;;  %v1425_v5 = vpack.c.bf16 %v47_v4, %v46_v3  ;;  %v35_v1 = vld [vmem:[%s1868_s3] sm:$0x1] }
   0xf   :  { %1250 = vmatpush3.bf16.msra.mxu0 %v1479_v8  ;;  %v105_v33 = vrot.slane %v103_v31, 1  ;;  %v285_v45 = vsel %vm282_vm5, %v283_v43, %v284_v41  ;;  %v1428_v8 = vpack.c.bf16 %v49_v7, %v48_v6  ;;  %v1431_v12 = vpack.c.bf16 %v51_v10, %v50_v9  ;;  %v1488_v41 = vld [vmem:[%s1866_s4 + $0x40] sm:$0xff]   ;;  %v1490_v43 = vld [vmem:[%s1866_s4 + $0x50] sm:$0xff]  }
  0x10   :  { %1255 = vmatprep.subr.bf16.mxu0 %v1480_v20  ;;  %v94_v32 = vor.u32 %v93_v28, %v89_v24  ;;  %v288_v52 = vsel %vm282_vm5, %v286_v48, %v287_v49  ;;  %1314 = vmatprep.subr.bf16.mxu1 %v1488_v41  ;;  %v1495_v48 = vld [vmem:[%s1866_s4 + $0x78] sm:$0xff]   ;;  %v1761_v49 = vld [vmem:[%s1866_s4] sm:$0xff]  }
  0x11   :  { %v106_v36 = vor.u32 %v105_v33, %v101_v30  ;;  %1315 = vmatpush3.bf16.msra.mxu1 %v1488_v41 }
  0x12   :  { %v99_v35 = vsel %vm87_vm3, %v94_v32, %v98_v29 }
  0x13   :  { %1251 = vmatprep.mubr.msk.bf16.mxu0 %vm145_vm4, %v99_v35  ;;  %v111_v38 = vsel %vm87_vm3, %v106_v36, %v110_v34 }
  0x14   :  { %1252 = vmatmul.mubr.msk.bf16.vlgmr.msra.gmra.mrb[0].mxu0 %vm145_vm4, %v111_v38 }
  0x15   :  { %1256 = vmatpush3.bf16.msra.mxu0 %v1480_v20  ;;  %1263 = vmatprep.mubr.msk.bf16.mxu0 %vm145_vm4, %v75_v21 }
  0x16   :  { %1257 = vmatprep.subr.bf16.mxu0 %v1481_v37 }
  0x19   :  { %1258 = vmatpush3.bf16.msra.mxu0 %v1481_v37 }
  0x1a   :  { %1259 = vmatprep.subr.bf16.mxu0 %v1482_v39 }
  0x1d   :  { %1260 = vmatpush3.bf16.msra.mxu0 %v1482_v39 }
  0x1e   :  { %1261 = vmatprep.subr.bf16.mxu0 %v1483_v40 }
  0x21   :  { %1262 = vmatpush3.bf16.msra.mxu0 %v1483_v40 }
  0x22   :  { %1267 = vmatprep.subr.bf16.mxu0 %v1484_v42 }
  0x24   :  { %1264 = vmatmul.mubr.msk.bf16.vlgmr.msra.gmra.mrb[0].mxu0 %vm145_vm4, %v76_v27 }
  0x25   :  { %1268 = vmatpush3.bf16.msra.mxu0 %v1484_v42  ;;  %1275 = vmatprep.mubr.msk.bf16.mxu0 %vm145_vm4, %v285_v45  ;;  %v1489_v42 = vld [vmem:[%s1866_s4 + $0x48] sm:$0xff]   ;;  %v1492_v45 = vld [vmem:[%s1866_s4 + $0x60] sm:$0xff]  }
  0x26   :  { %1269 = vmatprep.subr.bf16.mxu0 %v1485_v44  ;;  %1316 = vmatprep.subr.bf16.mxu1 %v1489_v42 }
  0x27   :  { %1317 = vmatpush3.bf16.msra.mxu1 %v1489_v42 }
  0x28   :  { %1318 = vmatprep.subr.bf16.mxu1 %v1490_v43 }
  0x29   :  { %1270 = vmatpush3.bf16.msra.mxu0 %v1485_v44  ;;  %v1491_v44 = vld [vmem:[%s1866_s4 + $0x58] sm:$0xff]  }
  0x2a   :  { %1271 = vmatprep.subr.bf16.mxu0 %v1486_v46 }
  0x2b   :  { %1319 = vmatpush3.bf16.msra.mxu1 %v1490_v43 }
  0x2c   :  { %1320 = vmatprep.subr.bf16.mxu1 %v1491_v44 }
  0x2d   :  { %1272 = vmatpush3.bf16.msra.mxu0 %v1486_v46  ;;  %v1493_v46 = vld [vmem:[%s1866_s4 + $0x68] sm:$0xff]  }
  0x2e   :  { %1273 = vmatprep.subr.bf16.mxu0 %v1487_v47 }
  0x2f   :  { %1321 = vmatpush3.bf16.msra.mxu1 %v1491_v44 }
  0x30   :  { %1322 = vmatprep.subr.bf16.mxu1 %v1492_v45 }
  0x31   :  { %1274 = vmatpush3.bf16.msra.mxu0 %v1487_v47  ;;  %v1494_v47 = vld [vmem:[%s1866_s4 + $0x70] sm:$0xff]  }
  0x32   :  { %1409 = vmatprep.subr.bf16.mxu0 %v1516_v54 }
  0x33   :  { %1323 = vmatpush3.bf16.msra.mxu1 %v1492_v45 }
  0x34   :  { %1276 = vmatmul.mubr.msk.bf16.vlgmr.msra.gmra.mrb[0].mxu0 %vm145_vm4, %v288_v52  ;;  %1324 = vmatprep.subr.bf16.mxu1 %v1493_v46 }
  0x35   :  { %1411 = vmatpush3.bf16.msra.mxu0 %v1640_v53  ;;  %1311 = vmatprep.mubr.msk.f32.mxu0 %vm1517_vm6, %v1518_v11 }
  0x36   :  { %1412 = vmatprep.subr.bf16.mxu0 %v1516_v54 }
  0x37   :  { %1325 = vmatpush3.bf16.msra.mxu1 %v1493_v46 }
  0x38   :  { %1326 = vmatprep.subr.bf16.mxu1 %v1494_v47 }
  0x39   :  { %1414 = vmatpush3.bf16.msra.mxu0 %v1651_v57 }
  0x3a   :  { %1415 = vmatprep.subr.bf16.mxu0 %v1516_v54 }
  0x3b   :  { %1327 = vmatpush3.bf16.msra.mxu1 %v1494_v47 }
  0x3c   :  { %1328 = vmatprep.subr.bf16.mxu1 %v1495_v48 }
  0x3d   :  { %1417 = vmatpush3.bf16.msra.mxu0 %v1662_v60 }
  0x3e   :  { %1418 = vmatprep.subr.bf16.mxu0 %v1516_v54 }
  0x3f   :  { %1329 = vmatpush3.bf16.msra.mxu1 %v1495_v48 }
  0x40   :  { %1334 = vmatprep.subr.bf16.mxu1 %v1761_v49 }
  0x41   :  { %1420 = vmatpush3.bf16.msra.mxu0 %v1419_v63 }
  0x42   :  { %1421 = vmatprep.subr.bf16.mxu0 %v1516_v54 }
  0x45   :  { %1423 = vmatpush3.bf16.msra.mxu0 %v1422_v2 }
  0x46   :  { %1424 = vmatprep.subr.bf16.mxu0 %v1516_v54 }
  0x49   :  { %1426 = vmatpush3.bf16.msra.mxu0 %v1425_v5 }
  0x4a   :  { %1427 = vmatprep.subr.bf16.mxu0 %v1516_v54 }
  0x4d   :  { %1429 = vmatpush3.bf16.msra.mxu0 %v1428_v8 }
  0x4e   :  { %1430 = vmatprep.subr.bf16.mxu0 %v1516_v54 }
  0x51   :  { %1432 = vmatpush3.bf16.msra.mxu0 %v1431_v12 }
  0x52   :  { %1433 = vmatprep.subr.bf16.mxu0 %v1516_v54 }
 0x107   :  { %v1702_v13 = vpop.f32.mrb[0].mxu0 }
 0x108   :  { %v1704_v14 = vpop.f32.mrb[1].mxu0  ;;  %v392_v21 = vmul.f32 %v1702_v13, %v1702_v13 }
 0x109   :  { %v1706_v16 = vpop.f32.mrb[2].mxu0  ;;  %v390_v18 = vmul.f32 %v1704_v14, %v1704_v14 }
 0x10a   :  { %v1708_v17 = vpop.f32.mrb[3].mxu0  ;;  %v393_v24 = vmul.f32 %v1706_v16, %v1706_v16 }
 0x10b   :  { %v381_v19 = vadd.f32 %v1708_v17, %v1704_v14  ;;  %v391_v20 = vmul.f32 %v1708_v17, %v1708_v17 }
 0x10d   :  { %v382_v22 = vadd.f32 %v1702_v13, %v381_v19  ;;  %v394_v23 = vadd.f32 %v391_v20, %v390_v18 }
 0x10f   :  { %v383_v25 = vadd.f32 %v1706_v16, %v382_v22  ;;  %v395_v26 = vadd.f32 %v394_v23, %v392_v21 }
 0x111   :  { %v384_v27 = vrot.slane %v383_v25, 4  ;;  %v396_v28 = vadd.f32 %v395_v26, %v393_v24 }
 0x113   :  { %v385_v29 = vadd.f32 %v384_v27, %v383_v25  ;;  %v397_v30 = vrot.slane %v396_v28, 4 }
 0x115   :  { %v386_v31 = vrot.slane %v385_v29, 2  ;;  %v398_v32 = vadd.f32 %v397_v30, %v396_v28 }
 0x117   :  { %v387_v33 = vadd.f32 %v386_v31, %v385_v29  ;;  %v399_v34 = vrot.slane %v398_v32, 2 }
 0x119   :  { %v388_v35 = vrot.slane %v387_v33, 1  ;;  %v400_v36 = vadd.f32 %v399_v34, %v398_v32 }
 0x11b   :  { %v401_v37 = vrot.slane %v400_v36, 1  ;;  %v389_v38 = vadd.f32 %v388_v35, %v387_v33 }
 0x11d   :  { %v402_v39 = vadd.f32 %v401_v37, %v400_v36 }
 0x11f   :  { %v404_v40 = vsel %vm72_vm1, %v389_v38, %v402_v39 }
 0x120   :  { %1312 = vmatmul.mubr.f32.vlgmr.msra.gmra.mrb[4].mxu0 %v404_v40 }
 0x121   :  { %1435 = vmatpush3.bf16.msra.mxu0 %v1640_v53  ;;  %1406 = vmatprep.mubr.msk.f32.mxu0 %vm1517_vm6, %v1518_v11 }
 0x122   :  { %1436 = vmatprep.subr.bf16.mxu0 %v1516_v54 }
 0x125   :  { %1438 = vmatpush3.bf16.msra.mxu0 %v1651_v57  ;;  %v495_v57 = vlaneseq }
 0x126   :  { %1439 = vmatprep.subr.bf16.mxu0 %v1516_v54 }
 0x127   :  { %v1764_v58 = vshrl.u32 %v495_v57, 7 }
 0x129   :  { %1441 = vmatpush3.bf16.msra.mxu0 %v1662_v60  ;;  %v497_v60 = vsub.s32 1, %v1764_v58 }
 0x12a   :  { %1442 = vmatprep.subr.bf16.mxu0 %v1516_v54 }
 0x12d   :  { %1444 = vmatpush3.bf16.msra.mxu0 %v1419_v63 }
 0x12e   :  { %1445 = vmatprep.subr.bf16.mxu0 %v1516_v54 }
 0x131   :  { %1447 = vmatpush3.bf16.msra.mxu0 %v1422_v2  ;;  %v506_v2 = vsub.s32 0, %v1764_v58 }
 0x132   :  { %1448 = vmatprep.subr.bf16.mxu0 %v1516_v54 }
 0x135   :  { %1450 = vmatpush3.bf16.msra.mxu0 %v1425_v5 }
 0x136   :  { %1451 = vmatprep.subr.bf16.mxu0 %v1516_v54 }
 0x139   :  { %1453 = vmatpush3.bf16.msra.mxu0 %v1428_v8 }
 0x13a   :  { %1454 = vmatprep.subr.bf16.mxu0 %v1516_v54 }
 0x13d   :  { %1456 = vmatpush3.bf16.msra.mxu0 %v1431_v12 }
 0x1f3   :  { %v471_v50 = vpop.f32.mrb[4].mxu0 }
 0x1f4   :  { %v475_v51 = vmul.f32 0.001953125, %v471_v50  ;;  %v1313_v52 = vpop.f32.mrb[5].mxu0 }
 0x1f5   :  { %v1499_v52 = vld [vmem:[%s1866_s4 + $0x18] sm:$0xff]  }
 0x1f6   :  { %v476_v53 = vmul.f32 %v475_v51, %v475_v51 }
 0x1f8   :  { %v478_v54 = vrot.slane %v476_v53, 7  ;;  %v1500_v53 = vld [vmem:[%s1866_s4 + $0x20] sm:$0xff]  }
 0x1fa   :  { %v480_v55 = vsub.f32 %v475_v51, %v478_v54  ;;  %v1502_v54 = vld [vmem:[%s1866_s4 + $0x30] sm:$0xff]  }
 0x1fc   :  { %v481_v56 = vadd.f32 1e-05, %v480_v55  ;;  %v1503_v55 = vld [vmem:[%s1866_s4 + $0x38] sm:$0xff]  }
 0x1fe   :  { %1512 = vrsqrt.f32 %v481_v56  ;;  %v1504_v56 = vld [vmem:[%s1866_s4 + $0x80] sm:$0xff]  }
 0x208   :  { %v1513_v61 = vpop.eup %1512 }
 0x209   :  { %v489_v62 = vmul.f32 %v1513_v61, %v1103_v59  ;;  %v1505_v61 = vld [vmem:[%s1866_s4 + $0x88] sm:$0xff]  }
 0x20b   :  { %v491_v63 = vrot.slane %v489_v62, 1  ;;  %v498_v0 = vrot.slane %v489_v62, %v497_v60 }
 0x20d   :  { %v493_v3 = vmul.f32 %v491_v63, %v475_v51  ;;  %v499_v4 = vmul.f32 %v498_v0, %v1704_v14  ;;  %v500_v5 = vmul.f32 %v498_v0, %v1708_v17  ;;  %v501_v6 = vmul.f32 %v1702_v13, %v498_v0  ;;  %v1498_v51 = vld [vmem:[%s1866_s4 + $0x10] sm:$0xff]  }
 0x20e   :  { %v502_v7 = vmul.f32 %v1706_v16, %v498_v0  ;;  %v1506_v63 = vld [vmem:[%s1866_s4 + $0x90] sm:$0xff]   ;;  %v1507_v0 = vld [vmem:[%s1866_s4 + $0x98] sm:$0xff]  }
 0x20f   :  { %v494_v8 = vsub.f32 %v35_v1, %v493_v3  ;;  %v1508_v1 = vld [vmem:[%s1866_s4 + $0xa0] sm:$0xff]   ;;  %v1509_v3 = vld [vmem:[%s1866_s4 + $0xa8] sm:$0xff]  }
 0x211   :  { %v507_v9 = vrot.slane %v494_v8, %v506_v2 }
 0x213   :  { %v509_v10 = vadd.f32 %v507_v9, %v499_v4  ;;  %v510_v11 = vadd.f32 %v507_v9, %v500_v5  ;;  %v511_v12 = vadd.f32 %v507_v9, %v501_v6  ;;  %v512_v18 = vadd.f32 %v507_v9, %v502_v7  ;;  %v1510_v4 = vld [vmem:[%s1866_s4 + $0xb0] sm:$0xff]   ;;  %v1511_v5 = vld [vmem:[%s1866_s4 + $0xb8] sm:$0xff]  }
 0x215   :  { %v513_v19 = vmax.f32 %v509_v10, 0.0  ;;  %v514_v20 = vmax.f32 %v510_v11, 0.0  ;;  %v515_v21 = vmax.f32 %v511_v12, 0.0  ;;  %v516_v22 = vmax.f32 %v512_v18, 0.0 }
 0x217   :  { %v519_v23 = vpack.c.bf16 %v514_v20, %v513_v19  ;;  %v520_v14 = vpack.c.bf16 %v516_v22, %v515_v21 }
 0x219   :  { %v522_v24 = vshrl.u32 %v519_v23, 16  ;;  %v529_v17 = vshrl.u32 %v520_v14, 16  ;;  %v525_v13 = vshll.u32 %v519_v23, 16  ;;  %v532_v16 = vshll.u32 %v520_v14, 16 }
 0x21b   :  { %v524_v25 = vrot.slane %v522_v24, 7  ;;  %v531_v26 = vrot.slane %v529_v17, 7 }
 0x21d   :  { %v527_v27 = vor.u32 %v525_v13, %v524_v25  ;;  %v541_v28 = vsel %vm1589_vm2, %v524_v25, 0  ;;  %v534_v29 = vor.u32 %v532_v16, %v531_v26  ;;  %v542_v30 = vsel %vm1589_vm2, %v531_v26, 0 }
 0x21e   :  { %v567_v34 = vshll.u32 %v541_v28, 16  ;;  %v579_v36 = vshll.u32 %v542_v30, 16  ;;  %v804_v38 = vrot.slane %v542_v30, 1  ;;  %v801_v59 = vrot.slane %v541_v28, 1 }
 0x21f   :  { %v539_v31 = vsel %vm1589_vm2, 0, %v527_v27  ;;  %v540_v32 = vsel %vm1589_vm2, 0, %v534_v29 }
 0x220   :  { %v562_v33 = vshll.u32 %v539_v31, 16  ;;  %v574_v35 = vshll.u32 %v540_v32, 16  ;;  %v803_v37 = vrot.slane %v540_v32, 1  ;;  %v560_v39 = vshrl.u32 %v539_v31, 16 }
 0x221   :  { %v572_v41 = vshrl.u32 %v540_v32, 16  ;;  %v569_v45 = vrot.slane %v567_v34, 1  ;;  %v581_v47 = vrot.slane %v579_v36, 1  ;;  %v800_v57 = vrot.slane %v539_v31, 1 }
 0x222   :  { %v564_v40 = vrot.slane %v562_v33, 1  ;;  %v576_v42 = vrot.slane %v574_v35, 1  ;;  %v805_v43 = vsel %vm282_vm5, %v803_v37, %v804_v38 }
 0x223   :  { %v802_v62 = vsel %vm282_vm5, %v800_v57, %v801_v59 }
 0x224   :  { %v565_v44 = vor.u32 %v564_v40, %v560_v39  ;;  %v577_v46 = vor.u32 %v576_v42, %v572_v41  ;;  %v1160_v41 = vld [vmem:[%s1869_s5] ss:$0 sm:$0xff] }
 0x226   :  { %v570_v48 = vsel %vm87_vm3, %v565_v44, %v569_v45  ;;  %v582_v50 = vsel %vm87_vm3, %v577_v46, %v581_v47  ;;  %v518_v46 = vld [vmem:[%s1870_s6] sm:$0x1] }
 0x227   :  { %1330 = vmatprep.mubr.bf16.mxu1 %v570_v48 }
 0x228   :  { %1331 = vmatmul.mubr.bf16.vlgmr.msra.gmra.mrb[0].mxu1 %v582_v50 }
 0x229   :  { %1335 = vmatpush3.bf16.msra.mxu1 %v1761_v49  ;;  %1350 = vmatprep.mubr.bf16.mxu1 %v539_v31  ;;  %v1501_v49 = vld [vmem:[%s1866_s4 + $0x28] sm:$0xff]  }
 0x22a   :  { %1336 = vmatprep.subr.bf16.mxu1 %v1497_v15 }
 0x22d   :  { %1337 = vmatpush3.bf16.msra.mxu1 %v1497_v15 }
 0x22e   :  { %1338 = vmatprep.subr.bf16.mxu1 %v1498_v51 }
 0x231   :  { %1339 = vmatpush3.bf16.msra.mxu1 %v1498_v51 }
 0x232   :  { %1340 = vmatprep.subr.bf16.mxu1 %v1499_v52 }
 0x235   :  { %1341 = vmatpush3.bf16.msra.mxu1 %v1499_v52 }
 0x236   :  { %1342 = vmatprep.subr.bf16.mxu1 %v1500_v53 }
 0x239   :  { %1343 = vmatpush3.bf16.msra.mxu1 %v1500_v53 }
 0x23a   :  { %1344 = vmatprep.subr.bf16.mxu1 %v1501_v49 }
 0x23d   :  { %1345 = vmatpush3.bf16.msra.mxu1 %v1501_v49 }
 0x23e   :  { %1346 = vmatprep.subr.bf16.mxu1 %v1502_v54 }
 0x241   :  { %1347 = vmatpush3.bf16.msra.mxu1 %v1502_v54 }
 0x242   :  { %1348 = vmatprep.subr.bf16.mxu1 %v1503_v55 }
 0x245   :  { %1349 = vmatpush3.bf16.msra.mxu1 %v1503_v55 }
 0x246   :  { %1354 = vmatprep.subr.bf16.mxu1 %v1504_v56 }
 0x248   :  { %1351 = vmatmul.mubr.bf16.vlgmr.msra.gmra.mrb[0].mxu1 %v540_v32 }
 0x249   :  { %1355 = vmatpush3.bf16.msra.mxu1 %v1504_v56  ;;  %1370 = vmatprep.mubr.bf16.mxu1 %v802_v62 }
 0x24a   :  { %1356 = vmatprep.subr.bf16.mxu1 %v1505_v61 }
 0x24d   :  { %1357 = vmatpush3.bf16.msra.mxu1 %v1505_v61 }
 0x24e   :  { %1358 = vmatprep.subr.bf16.mxu1 %v1506_v63 }
 0x251   :  { %1359 = vmatpush3.bf16.msra.mxu1 %v1506_v63 }
 0x252   :  { %1360 = vmatprep.subr.bf16.mxu1 %v1507_v0 }
 0x255   :  { %1361 = vmatpush3.bf16.msra.mxu1 %v1507_v0 }
 0x256   :  { %1362 = vmatprep.subr.bf16.mxu1 %v1508_v1 }
 0x259   :  { %1363 = vmatpush3.bf16.msra.mxu1 %v1508_v1 }
 0x25a   :  { %1364 = vmatprep.subr.bf16.mxu1 %v1509_v3 }
 0x25d   :  { %1365 = vmatpush3.bf16.msra.mxu1 %v1509_v3 }
 0x25e   :  { %1366 = vmatprep.subr.bf16.mxu1 %v1510_v4 }
 0x261   :  { %1367 = vmatpush3.bf16.msra.mxu1 %v1510_v4 }
 0x262   :  { %1368 = vmatprep.subr.bf16.mxu1 %v1511_v5 }
 0x265   :  { %1369 = vmatpush3.bf16.msra.mxu1 %v1511_v5 }
 0x268   :  { %1371 = vmatmul.mubr.bf16.vlgmr.msra.gmra.mrb[0].mxu1 %v805_v43 }
 0x33b   :  { %v1372_v6 = vpop.f32.mrb[0].mxu1 }
 0x33c   :  { %v907_v7 = vpop.f32.mrb[1].mxu1  ;;  %v937_v18 = vmul.f32 %v1372_v6, %v1372_v6 }
 0x33d   :  { %v1373_v8 = vpop.f32.mrb[2].mxu1  ;;  %v935_v10 = vmul.f32 %v907_v7, %v907_v7 }
 0x33e   :  { %v910_v9 = vpop.f32.mrb[3].mxu1  ;;  %v938_v21 = vmul.f32 %v1373_v8, %v1373_v8 }
 0x33f   :  { %v926_v11 = vadd.f32 %v910_v9, %v907_v7  ;;  %v936_v12 = vmul.f32 %v910_v9, %v910_v9 }
 0x341   :  { %v927_v19 = vadd.f32 %v1372_v6, %v926_v11  ;;  %v939_v20 = vadd.f32 %v936_v12, %v935_v10 }
 0x343   :  { %v928_v22 = vadd.f32 %v1373_v8, %v927_v19  ;;  %v940_v23 = vadd.f32 %v939_v20, %v937_v18 }
 0x345   :  { %v929_v14 = vrot.slane %v928_v22, 4  ;;  %v941_v24 = vadd.f32 %v940_v23, %v938_v21 }
 0x347   :  { %v930_v17 = vadd.f32 %v929_v14, %v928_v22  ;;  %v942_v25 = vrot.slane %v941_v24, 4 }
 0x349   :  { %v931_v13 = vrot.slane %v930_v17, 2  ;;  %v943_v26 = vadd.f32 %v942_v25, %v941_v24 }
 0x34b   :  { %v932_v16 = vadd.f32 %v931_v13, %v930_v17  ;;  %v944_v27 = vrot.slane %v943_v26, 2 }
 0x34d   :  { %v933_v28 = vrot.slane %v932_v16, 1  ;;  %v945_v29 = vadd.f32 %v944_v27, %v943_v26 }
 0x34f   :  { %v946_v30 = vrot.slane %v945_v29, 1  ;;  %v934_v31 = vadd.f32 %v933_v28, %v932_v16 }
 0x351   :  { %v947_v32 = vadd.f32 %v946_v30, %v945_v29 }
 0x353   :  { %v948_v33 = vsel %vm72_vm1, %v934_v31, %v947_v32 }
 0x354   :  { %1407 = vmatmul.mubr.f32.vlgmr.msra.gmra.mrb[6].mxu0 %v948_v33 }
 0x427   :  { %v1015_v34 = vpop.f32.mrb[6].mxu0 }
 0x428   :  { %v1019_v35 = vmul.f32 0.001953125, %v1015_v34  ;;  %v1408_v36 = vpop.f32.mrb[7].mxu0 }
 0x42a   :  { %v1020_v37 = vmul.f32 %v1019_v35, %v1019_v35 }
 0x42c   :  { %v1022_v38 = vrot.slane %v1020_v37, 7 }
 0x42e   :  { %v1024_v39 = vsub.f32 %v1019_v35, %v1022_v38 }
 0x430   :  { %v1025_v40 = vadd.f32 1e-05, %v1024_v39 }
 0x432   :  { %1514 = vrsqrt.f32 %v1025_v40 }
 0x43c   :  { %v1515_v42 = vpop.eup %1514 }
 0x43d   :  { %v1033_v43 = vmul.f32 %v1515_v42, %v1160_v41 }
 0x43f   :  { %v1035_v44 = vrot.slane %v1033_v43, 1  ;;  %v1042_v45 = vrot.slane %v1033_v43, %v497_v60 }
 0x441   :  { %v1037_v47 = vmul.f32 %v1035_v44, %v1019_v35  ;;  %v1043_v48 = vmul.f32 %v1042_v45, %v907_v7  ;;  %v1044_v15 = vmul.f32 %v1042_v45, %v910_v9  ;;  %v1045_v50 = vmul.f32 %v1372_v6, %v1042_v45 }
 0x442   :  { %v1046_v51 = vmul.f32 %v1373_v8, %v1042_v45 }
 0x443   :  { %v1038_v52 = vsub.f32 %v518_v46, %v1037_v47 }
 0x445   :  { %v1051_v53 = vrot.slane %v1038_v52, %v506_v2 }
 0x447   :  { %v1053_v49 = vadd.f32 %v1051_v53, %v1043_v48  ;;  %v1054_v54 = vadd.f32 %v1051_v53, %v1044_v15  ;;  %v1055_v55 = vadd.f32 %v1051_v53, %v1045_v50  ;;  %v1056_v56 = vadd.f32 %v1051_v53, %v1046_v51 }
 0x449   :  { %v1057_v57 = vmax.f32 %v1053_v49, 0.0  ;;  %v1058_v59 = vmax.f32 %v1054_v54, 0.0  ;;  %v1059_v60 = vmax.f32 %v1055_v55, 0.0  ;;  %v1060_v61 = vmax.f32 %v1056_v56, 0.0 }
 0x44b   :  { %1061 = vst [vmem:[%s1871_s8] sm:$0xff] %v1057_v57  ;;  %1062 = vst [vmem:[%s1871_s8 + $0x8] sm:$0xff] %v1058_v59 }
 0x44c   :  { %1063 = vst [vmem:[%s1871_s8 + $0x10] sm:$0xff] %v1059_v60  ;;  %1064 = vst [vmem:[%s1871_s8 + $0x18] sm:$0xff] %v1060_v61 }

</bundles_post_ra>
